<compile_context>
chip_gen: v6e
topology: v6e:2x2x1
jax: 0.10.0
libtpu: 0.0.40
codegen_flags: <defaults>
</compile_context>

<pallas_src>
import functools
import math

import jax
import jax.numpy as jnp
from jax.experimental import pallas as pl
from jax.experimental.pallas import tpu as pltpu

EPS = 1e-5
LANE = 128


# ----------------------------- Pallas kernels ------------------------------ #
def _linear_kernel(x_ref, w_ref, b_ref, o_ref, acc_ref):
    """out = x @ W + b  (norm='None').  Grid = (M_tiles, K_tiles)."""
    k = pl.program_id(1)

    @pl.when(k == 0)
    def _():
        # Seed the f32 accumulator with the bias: saves a separate final add.
        acc_ref[...] = jnp.broadcast_to(b_ref[...], acc_ref.shape)

    acc_ref[...] += jnp.dot(x_ref[...].astype(jnp.bfloat16), w_ref[...],
                            preferred_element_type=jnp.float32)

    @pl.when(k == pl.num_programs(1) - 1)
    def _():
        o_ref[...] = acc_ref[...].astype(o_ref.dtype)


def _linear_bn_kernel(x_ref, w_ref, gamma_ref, beta_ref, o_ref, acc_ref):
    """out = BatchNorm1d(x @ W)  (norm='BN').  Grid = (K_tiles,); whole batch
    stays resident so batch statistics are exact."""
    k = pl.program_id(0)

    @pl.when(k == 0)
    def _():
        acc_ref[...] = jnp.zeros_like(acc_ref)

    acc_ref[...] += jnp.dot(x_ref[...].astype(jnp.bfloat16), w_ref[...],
                            preferred_element_type=jnp.float32)

    @pl.when(k == pl.num_programs(0) - 1)
    def _():
        y = acc_ref[...]                                   # f32 accumulator
        mean = jnp.mean(y, axis=0, keepdims=True)
        mean_sq = jnp.mean(y * y, axis=0, keepdims=True)
        # Clamp single-pass variance: E[y^2]-E[y]^2 can go slightly negative
        # from f32 cancellation; one VPU max is free here.
        var = jnp.maximum(mean_sq - mean * mean, 0.0)
        y_hat = (y - mean) * jax.lax.rsqrt(var + EPS)
        o_ref[...] = (y_hat * gamma_ref[...] + beta_ref[...]).astype(o_ref.dtype)
    # TODO(synk): BatchNorm1d running_mean/running_var buffer updates (a
    # training-time side effect that does not affect this forward's output)
    # are not materialized.


# ------------------------------ Tile choice --------------------------------- #
def _choose_tk(K):
    """K (reduction) tile: keeps VMEM bounded as d_in grows (v7x guard)."""
    for tk in (1024, 512, 256):
        if K > tk and K % tk == 0:
            return tk
    return K


def _choose_tm(M):
    """M tile: split stacked batches across a 'parallel' grid axis."""
    if M > 256 and M % 256 == 0:
        return 256          # fills a full MXU pass on v6e/v7x
    if M > 128 and M % 128 == 0:
        return 128
    return M


# ------------------------------ Wrapper ------------------------------------- #
@functools.partial(jax.jit, static_argnames=("norm",))
def linear_single_layer_forward(params, x_nchw, norm):
    """Fused forward. Returns the lane-dense padded (M, 128) logit slab; the
    caller slices [:, :num_classes] only if the consumer can't read padding."""
    M = x_nchw.shape[0]
    xf = x_nchw.reshape(M, -1)                   # x.view(x.size(0), -1)
    K = xf.shape[1]
    Np = params["w"].shape[1]                    # lane-dense padded width (128)

    tk = _choose_tk(K)
    kt = K // tk

    bytes_accessed = xf.size * 4 + params["w"].size * 2 + M * Np * 4 + 3 * Np * 4
    cost = pl.CostEstimate(flops=2 * M * K * Np,
                           transcendentals=(Np if norm == "BN" else 0),
                           bytes_accessed=bytes_accessed)

    if norm == "BN":
        grid_spec = pltpu.PrefetchScalarGridSpec(
            num_scalar_prefetch=0,
            grid=(kt,),
            in_specs=[
                pl.BlockSpec((M, tk), lambda k: (0, k)),       # x
                pl.BlockSpec((tk, Np), lambda k: (k, 0)),      # W (bf16)
                pl.BlockSpec((1, Np), lambda k: (0, 0)),       # gamma
                pl.BlockSpec((1, Np), lambda k: (0, 0)),       # beta
            ],
            out_specs=pl.BlockSpec((M, Np), lambda k: (0, 0)),
            scratch_shapes=[pltpu.VMEM((M, Np), jnp.float32)],
        )
        out = pl.pallas_call(
            _linear_bn_kernel,
            out_shape=jax.ShapeDtypeStruct((M, Np), jnp.float32),
            grid_spec=grid_spec,
            compiler_params=pltpu.CompilerParams(
                dimension_semantics=("arbitrary",)),
            cost_estimate=cost,
        )(xf, params["w"], params["gamma"], params["beta"])
    else:
        tm = _choose_tm(M)
        mt = M // tm
        grid_spec = pltpu.PrefetchScalarGridSpec(
            num_scalar_prefetch=0,
            grid=(mt, kt),
            in_specs=[
                pl.BlockSpec((tm, tk), lambda i, k: (i, k)),   # x
                pl.BlockSpec((tk, Np), lambda i, k: (k, 0)),   # W (bf16)
                pl.BlockSpec((1, Np), lambda i, k: (0, 0)),    # bias
            ],
            out_specs=pl.BlockSpec((tm, Np), lambda i, k: (i, 0)),
            scratch_shapes=[pltpu.VMEM((tm, Np), jnp.float32)],
        )
        out = pl.pallas_call(
            _linear_kernel,
            out_shape=jax.ShapeDtypeStruct((M, Np), jnp.float32),
            grid_spec=grid_spec,
            compiler_params=pltpu.CompilerParams(
                dimension_semantics=("parallel", "arbitrary")),
            cost_estimate=cost,
        )(xf, params["w"], params["b"])

    return out                                   # padded, lane-dense


# ------------------------- Parameter construction -------------------------- #
def make_params(key, norm="None", channels=3, image_dim=16, num_classes=10):
    """nn.Linear U(-1/sqrt(fan_in), 1/sqrt(fan_in)) init, padded to lane width.

    Weights stored in HBM as bf16 (halves the dominant weight DMA; matmul
    accumulates in f32). Zero-padded columns keep the padded lanes inert."""
    d_in = channels * image_dim * image_dim
    f_pad = ((num_classes + LANE - 1) // LANE) * LANE
    bound = 1.0 / math.sqrt(d_in)
    kw, kb = jax.random.split(key)

    w = jax.random.uniform(kw, (d_in, num_classes), jnp.float32, -bound, bound)
    w_pad = jnp.zeros((d_in, f_pad), jnp.float32).at[:, :num_classes].set(w)
    params = {"w": w_pad.astype(jnp.bfloat16)}

    if norm == "BN":
        # nn.Linear(..., bias=False) + BatchNorm1d(num_classes), affine default
        params["gamma"] = jnp.ones((1, f_pad), jnp.float32)
        params["beta"] = jnp.zeros((1, f_pad), jnp.float32)
    else:
        b = jax.random.uniform(kb, (num_classes,), jnp.float32, -bound, bound)
        params["b"] = jnp.zeros((1, f_pad), jnp.float32).at[0, :num_classes].set(b)
    return params


# ------------------------------ Reference ---------------------------------- #
def reference_forward(params, x_nchw, norm, num_classes, matmul_dtype):
    """Pure-JAX reference. matmul_dtype=bf16 mirrors the kernel's MXU path;
    matmul_dtype=f32 is a looser sanity check."""
    B = x_nchw.shape[0]
    xf = x_nchw.reshape(B, -1).astype(matmul_dtype)
    w = params["w"].astype(matmul_dtype)
    y = jnp.dot(xf, w, preferred_element_type=jnp.float32)
    if norm == "BN":
        m = jnp.mean(y, axis=0, keepdims=True)
        v = jnp.mean((y - m) ** 2, axis=0, keepdims=True)
        y = (y - m) / jnp.sqrt(v + EPS) * params["gamma"] + params["beta"]
    else:
        y = y + params["b"]
    return y[:, :num_classes]


# --------------------------------- Main ------------------------------------ #
if __name__ == "__main__":
    key = jax.random.PRNGKey(0)
    k_param, k_x = jax.random.split(key)

    C, Hd, Wd = 3, 16, 16
    num_classes = 10

    # M=8   : single tiny batch, trivial grid (1, kt) / (kt,).
    # M=256 : stacked batches in one call — exercises the M-"parallel" grid
    #         (both v7x TCs) and K-tiled accumulator, and amortizes weight DMA.
    for M in (8, 256):
        x = jax.random.normal(k_x, (M, C, Hd, Wd), dtype=jnp.float32)
        for norm in ("None", "BN"):
            params = make_params(k_param, norm=norm, channels=C, image_dim=Hd,
                                 num_classes=num_classes)

            out_pad = jax.block_until_ready(
                linear_single_layer_forward(params, x, norm))

            assert out_pad.shape == (M, LANE), (M, norm, out_pad.shape)
            assert not bool(jnp.any(jnp.isnan(out_pad))), (M, norm)

            # Consumer-side slice (kept outside the fused kernel on purpose).
            out = out_pad[:, :num_classes]

            # Tight check vs. reference using the same bf16-operand / f32-accum
            # path (accumulation-order differences only).
            ref_bf16 = reference_forward(params, x, norm, num_classes,
                                         jnp.bfloat16)
            err = float(jnp.max(jnp.abs(out - ref_bf16)))
            assert jnp.allclose(out, ref_bf16, atol=3e-4, rtol=3e-4), \
                (M, norm, err)

            # Loose sanity check vs. full-f32 math (bf16 quantization only).
            ref_f32 = reference_forward(params, x, norm, num_classes,
                                        jnp.float32)
            err32 = float(jnp.max(jnp.abs(out - ref_f32)))
            assert jnp.allclose(out, ref_f32, atol=5e-2, rtol=5e-2), \
                (M, norm, err32)

    print("KERNEL_OK")
</pallas_src>

<mosaic_0001>
module attributes {stable_mosaic.version = 11 : i64} {
  func.func @_linear_kernel(%arg0: i32, %arg1: i32, %arg2: memref<8x256xf32, #tpu.memory_space<vmem>>, %arg3: memref<256x128xbf16, #tpu.memory_space<vmem>>, %arg4: memref<1x128xf32, #tpu.memory_space<vmem>>, %arg5: memref<8x128xf32, #tpu.memory_space<vmem>>, %arg6: memref<8x128xf32, #tpu.memory_space<vmem>>) attributes {dimension_semantics = [#tpu.dimension_semantics<parallel>, #tpu.dimension_semantics<arbitrary>], iteration_bounds = array<i64: 1, 3>, scalar_prefetch = 0 : i64, scratch_operands = 1 : i64, tpu.core_type = #tpu.core_type<tc>, window_params = [{transform_indices = @transform_0, window_bounds = array<i64: 8, 256>}, {transform_indices = @transform_1, window_bounds = array<i64: 256, 128>}, {pipeline_mode = #tpu.pipeline_mode<synchronous>, transform_indices = @transform_2, window_bounds = array<i64: 1, 128>}, {transform_indices = @transform_3, window_bounds = array<i64: 8, 128>}]} {
    %c0_i32 = arith.constant 0 : i32
    %0 = arith.cmpi eq, %arg1, %c0_i32 : i32
    %1 = arith.extui %0 : i1 to i32
    %c0_i32_0 = arith.constant 0 : i32
    %2 = arith.cmpi ne, %1, %c0_i32_0 : i32
    scf.if %2 {
      %c0_9 = arith.constant 0 : index
      %c0_10 = arith.constant 0 : index
      %13 = vector.load %arg4[%c0_9, %c0_10] : memref<1x128xf32, #tpu.memory_space<vmem>>, vector<1x128xf32>
      %14 = vector.shape_cast %13 : vector<1x128xf32> to vector<1x128xf32>
      %15 = vector.broadcast %14 : vector<1x128xf32> to vector<8x128xf32>
      %c0_11 = arith.constant 0 : index
      %c0_12 = arith.constant 0 : index
      %16 = vector.load %arg6[%c0_11, %c0_12] : memref<8x128xf32, #tpu.memory_space<vmem>>, vector<8x128xf32>
      tpu.vector_store %arg6[%c0_11, %c0_12], %15 {strides = array<i32>} : memref<8x128xf32, #tpu.memory_space<vmem>>, vector<8x128xf32>,
    } else {
    }
    %c0 = arith.constant 0 : index
    %c0_1 = arith.constant 0 : index
    %3 = vector.load %arg6[%c0, %c0_1] : memref<8x128xf32, #tpu.memory_space<vmem>>, vector<8x128xf32>
    %c0_2 = arith.constant 0 : index
    %c0_3 = arith.constant 0 : index
    %4 = vector.load %arg2[%c0_2, %c0_3] : memref<8x256xf32, #tpu.memory_space<vmem>>, vector<8x256xf32>
    %5 = arith.truncf %4 : vector<8x256xf32> to vector<8x256xbf16>
    %c0_4 = arith.constant 0 : index
    %c0_5 = arith.constant 0 : index
    %6 = vector.load %arg3[%c0_4, %c0_5] : memref<256x128xbf16, #tpu.memory_space<vmem>>, vector<256x128xbf16>
    %cst = arith.constant dense<0.000000e+00> : vector<8x128xf32>
    %7 = tpu.matmul %5, %6, %cst {dimension_numbers = #tpu.dot_dimension_numbers<[1], [0], [0], [1], [0, 0, 1, 1], [], []>} : vector<8x256xbf16>, vector<256x128xbf16>, vector<8x128xf32> -> vector<8x128xf32>
    %8 = arith.addf %3, %7 : vector<8x128xf32>
    %c0_6 = arith.constant 0 : index
    %c0_7 = arith.constant 0 : index
    %9 = vector.load %arg6[%c0_6, %c0_7] : memref<8x128xf32, #tpu.memory_space<vmem>>, vector<8x128xf32>
    tpu.vector_store %arg6[%c0_6, %c0_7], %8 {strides = array<i32>} : memref<8x128xf32, #tpu.memory_space<vmem>>, vector<8x128xf32>,
    %c2_i32 = arith.constant 2 : i32
    %10 = arith.cmpi eq, %arg1, %c2_i32 : i32
    %11 = arith.extui %10 : i1 to i32
    %c0_i32_8 = arith.constant 0 : i32
    %12 = arith.cmpi ne, %11, %c0_i32_8 : i32
    scf.if %12 {
      %c0_9 = arith.constant 0 : index
      %c0_10 = arith.constant 0 : index
      %13 = vector.load %arg6[%c0_9, %c0_10] : memref<8x128xf32, #tpu.memory_space<vmem>>, vector<8x128xf32>
      %c0_11 = arith.constant 0 : index
      %c0_12 = arith.constant 0 : index
      %14 = vector.load %arg5[%c0_11, %c0_12] : memref<8x128xf32, #tpu.memory_space<vmem>>, vector<8x128xf32>
      tpu.vector_store %arg5[%c0_11, %c0_12], %13 {strides = array<i32>} : memref<8x128xf32, #tpu.memory_space<vmem>>, vector<8x128xf32>,
    } else {
    }
    return
  }
  func.func @transform_0(%arg0: i32, %arg1: i32) -> (i32, i32) {
    %c0_i32 = arith.constant 0 : i32
    return %arg0, %arg1 : i32, i32
  }
  func.func @transform_1(%arg0: i32, %arg1: i32) -> (i32, i32) {
    %c0_i32 = arith.constant 0 : i32
    %c0_i32_0 = arith.constant 0 : i32
    return %arg1, %c0_i32 : i32, i32
  }
  func.func @transform_2(%arg0: i32, %arg1: i32) -> (i32, i32) {
    %c0_i32 = arith.constant 0 : i32
    %c0_i32_0 = arith.constant 0 : i32
    %c0_i32_1 = arith.constant 0 : i32
    return %c0_i32, %c0_i32_0 : i32, i32
  }
  func.func @transform_3(%arg0: i32, %arg1: i32) -> (i32, i32) {
    %c0_i32 = arith.constant 0 : i32
    %c0_i32_0 = arith.constant 0 : i32
    return %arg0, %c0_i32 : i32, i32
  }
}

</mosaic_0001>

<bundles_post_ra>
// kernel: linear_single_layer_forward.1
= control target key start
LH: loop header
LB: loop body
LE: loop exit
PB: predicated region body
PF: predicated region fallthrough
CT: control target
= control target key end

     0   :  { %8 = vsyncpa [#allocation4], 0  ;;  %s656_s12 = smov 0   ;;  %s658_s13 = smov 0   ;;  %s738_s0 = inlined_call_operand.vmem [shape: f32[8,768], index: 0, kind: input, shape index: {}]   ;;  %s739_s1 = inlined_call_operand.vmem [shape: bf16[768,128], index: 1, kind: input, shape index: {}]   ;;  %s740_s2 = inlined_call_operand.vmem [shape: f32[1,128], index: 2, kind: input, shape index: {}]   ;;  %s741_s3 = inlined_call_operand.hbm [shape: f32[8,128], index: 3, kind: output, shape index: {}]  }
   0x1   :  { %s660_s14 = smov 0  }
   0x2 LB: > { %s483_s15 = sadd.s32 4294967295, %s633_s14   ;;  %s23_s16 = sadd.s32 1, %s629_s13  ;;  %s633_s14 = sphi %s660_s14, %s14_s14   ;;  %s629_s13 = sphi %s658_s13, %s744_s13   ;;  %s625_s12 = sphi %s656_s12, %s743_s12  }
   0x3   : > { %p24_p0 = scmp.ge.s32.totalorder %s23_s16, 3  ;;  %p486_p1 = scmp.ge.s32.totalorder %s633_s14, 1 }
   0x4   : > { %p168_p2 = scmp.lt.s32.totalorder %s633_s14, 4 }
   0x5   : > { %s746_s16 = smov (%p24_p0, %s23_s16), 0 }
   0x6   : > { %p169_p3 = pnand %p486_p1, %p168_p2 }
   0x7   : > { %s487_s17 = sshll.u32 (!%p169_p3), %s625_s12, 1  ;;  %s489_s18 = sshll.u32 (!%p169_p3), %s625_s12, 5 }
   0x8   : > { %172 = sbr.rel (%p169_p3) target bundleno = 279 (0x117), region = 32  ;;  %p199_p4 = scmp.lt.s32.totalorder (!%p169_p3), %s487_s17, 5 }
   0x9   : > { %p207_p5 = scmp.lt.s32.totalorder (!%p169_p3), %s489_s18, 95  ;;  %p491_p6 = scmp.ne.s32.totalorder (!%p169_p3), %s625_s12, 0 }
   0xd   : > { %s748_s17 = smov (!%p199_p4, %s487_s17), 5  ;;  %s750_s18 = smov (!%p207_p5, %s489_s18), 95 }
   0xe   : > { %s488_s19 = sshll.u32 %s748_s17, 3  ;;  %s490_s23 = sshll.u32 %s750_s18, 2 }
   0xf   : > { %s682_s22 = scalar_lea.vmem %s738_s0, %s488_s19  ;;  %s687_s26 = scalar_lea.vmem %s739_s1, %s490_s23 }
  0x10   : > { %216 = sbr.rel (%p491_p6) target bundleno = 23 (0x17), region = 36 }
  0x15   : > { %v492_v0 = vld [vmem:[%s740_s2] ss:$0 sm:$0xff] }
  0x16   : > { %224 = vst [vmem:[#allocation2] sm:$0xff] %v492_v0 }
  0x17 PF: > { %v567_v1 = vld [vmem:[%s687_s26 + $0x78] sm:$0xff]   ;;  %v569_v3 = vld [vmem:[%s687_s26 + $0x70] sm:$0xff]   ;;  %v571_v5 = vld [vmem:[%s687_s26 + $0x68] sm:$0xff]   ;;  %p509_p7 = scmp.ne.s32.totalorder %s625_s12, 2 }
  0x18   : > { %v568_v2 = vld [vmem:[%s687_s26 + $0x38] sm:$0xff]   ;;  %514 = vmatprep.subr.bf16.mxu0 %v567_v1  ;;  %v570_v4 = vld [vmem:[%s687_s26 + $0x30] sm:$0xff]   ;;  %v572_v6 = vld [vmem:[%s687_s26 + $0x28] sm:$0xff]  }
  0x19   : > { %515 = vmatpush3.bf16.msra.mxu0 %v568_v2  ;;  %v573_v7 = vld [vmem:[%s687_s26 + $0x60] sm:$0xff]   ;;  %v575_v9 = vld [vmem:[%s687_s26 + $0x58] sm:$0xff]   ;;  %v577_v11 = vld [vmem:[%s687_s26 + $0x50] sm:$0xff]  }
  0x1a   : > { %516 = vmatprep.subr.bf16.mxu0 %v569_v3  ;;  %v574_v8 = vld [vmem:[%s687_s26 + $0x20] sm:$0xff]   ;;  %v576_v10 = vld [vmem:[%s687_s26 + $0x18] sm:$0xff]   ;;  %v227_v12 = vld [vmem:[%s682_s22 + $0x8] sm:$0xff] }
  0x1b   : > { %v229_v13 = vpack.c.bf16 %v227_v12, %v227_v12  ;;  %v578_v14 = vld [vmem:[%s687_s26 + $0x10] sm:$0xff]   ;;  %v579_v15 = vld [vmem:[%s687_s26 + $0x48] sm:$0xff]   ;;  %v581_v17 = vld [vmem:[%s687_s26 + $0x40] sm:$0xff]  }
  0x1c   : > { %v580_v16 = vld [vmem:[%s687_s26 + $0x8] sm:$0xff]   ;;  %v582_v18 = vld [vmem:[%s687_s26] sm:$0xff]  }
  0x1d   : > { %517 = vmatpush3.bf16.msra.mxu0 %v570_v4  ;;  %390 = vmatprep.mubr.bf16.mxu0 %v229_v13  ;;  %v226_v19 = vld [vmem:[%s682_s22] sm:$0xff] }
  0x1e   : > { %518 = vmatprep.subr.bf16.mxu0 %v571_v5  ;;  %v228_v20 = vpack.c.bf16 %v226_v19, %v226_v19  ;;  %v225_v22 = vld [vmem:[#allocation2] sm:$0xff] }
  0x21   : > { %519 = vmatpush3.bf16.msra.mxu0 %v572_v6 }
  0x22   : > { %520 = vmatprep.subr.bf16.mxu0 %v573_v7 }
  0x25   : > { %521 = vmatpush3.bf16.msra.mxu0 %v574_v8 }
  0x26   : > { %522 = vmatprep.subr.bf16.mxu0 %v575_v9 }
  0x29   : > { %523 = vmatpush3.bf16.msra.mxu0 %v576_v10 }
  0x2a   : > { %524 = vmatprep.subr.bf16.mxu0 %v577_v11 }
  0x2d   : > { %525 = vmatpush3.bf16.msra.mxu0 %v578_v14 }
  0x2e   : > { %526 = vmatprep.subr.bf16.mxu0 %v579_v15 }
  0x31   : > { %527 = vmatpush3.bf16.msra.mxu0 %v580_v16 }
  0x32   : > { %528 = vmatprep.subr.bf16.mxu0 %v581_v17 }
  0x35   : > { %529 = vmatpush3.bf16.msra.mxu0 %v582_v18 }
  0x38   : > { %391 = vmatmul.mubr.bf16.vlgmr.msra.gmra.mxu0 %v228_v20 }
  0xf8   : > { %v530_v21 = vpop.f32.mrf.mxu0 }
  0xfa   : > { %v531_v23 = vpop.f32.mrf.mxu0 }
  0xfb   : > { %v532_v24 = vadd.f32 %v531_v23, %v530_v21  ;;  %403 = sbr.rel (%p509_p7) target bundleno = 264 (0x108), region = 40 }
  0xfc   : > { %v533_v25 = vpop.f32.mrf.mxu0 }
  0xfd   : > { %v398_v26 = vadd.f32 %v532_v24, %v225_v22 }
  0xfe   : > { %v534_v27 = vpop.f32.mrf.mxu0 }
  0xff   : > { %399 = vst [vmem:[#allocation2] sm:$0xff] %v398_v26 }
 0x106   : > { %v404_v28 = vld [vmem:[#allocation2] sm:$0xff] }
 0x107   : > { %405 = vst [vmem:[#allocation3] sm:$0xff] %v404_v28 }
 0x108 PF: > { %p714_p8 = scmp.eq.s32.totalorder %s483_s15, 2  ;;  %s635_s30 = smov [#allocation3]  }
 0x109   : > { %s415_s4 = sshll.u32 %s635_s30, 4  ;;  %s416_s4 = int_to_ptr.vmem [resolvable:$true] %s415_s4 }
 0x10a   : > { %s583_s5 = scalar_lea.vmem %s416_s4, 128  ;;  %p590_p12 = scmp.lt.s32.totalorder %s416_s4, %s416_s4 }
 0x10b   : > { %p584_p9 = scmp.ne.s32.totalorder %s416_s4, %s583_s5  ;;  %p591_p13 = scmp.lt.s32.totalorder %s583_s5, %s583_s5 }
 0x10d   : > { %p585_p10 = pnand %p584_p9, %p714_p8  ;;  %p592_p0 = por %p591_p13, %p590_p12 }
 0x10f   : > { %p586_p11 = pneg %p585_p10 }
 0x111   : > { %p593_p1 = pnand %p592_p0, %p586_p11 }
 0x113   : > { %596 = shalt.err (!%p593_p1)
}
 0x114   : > { %537 = dma.vmem_to_hbm [thread:$0]  (%p714_p8), %s416_s4, 128, %s741_s3, [#allocation4]  }
 0x115   : > { %620 = dma.done.wait (%p714_p8), [#allocation4], 128  }
 0x116   : > { %622 = vsyncadd (%p714_p8), [#allocation4], 4294967168 }
 0x117 PF: > { %s14_s14 = sadd.s32 1, %s633_s14   ;;  %s743_s12 = smov %s629_s13 }
 0x118   : > { %p11_p2 = scmp.ge.s32.totalorder %s14_s14, 5   ;;  %s744_s13 = smov %s746_s16 }
 0x11a   :  { %13 = sbr.rel (!%p11_p2) target bundleno = 2 (0x2), region = 71 }
 0x11f   :  { %428 = vsyncpa [#allocation4], 1 }
 0x120   :  { %430 = vsyncpa [#allocation4 + $0x1], 1 }

</bundles_post_ra>
